<compile_context>
chip_gen: v7x
topology: tpu7x:2x2x1
jax: 0.10.0
libtpu: 0.0.40
codegen_flags: <defaults>
</compile_context>

<pallas_src>
import functools

import jax
import jax.numpy as jnp
from jax.experimental import pallas as pl
from jax.experimental.pallas import tpu as pltpu


def _round_down(x, m):
    return (x // m) * m


def _vmem_budgets():
    """Return (target_block_bytes, vmem_limit_bytes), generation-aware."""
    cap = None
    try:
        cap = getattr(pltpu.get_tpu_info(), "vmem_capacity_bytes", None)
    except Exception:
        cap = None
    if cap is not None and cap >= 96 * 1024 * 1024:
        # 128 MiB VMEM parts (v5e / v6e): bigger blocks amortize the ~0.35us
        # per-step overhead; 2x-in + 2x-out of 8 MiB blocks = 32 MiB <= 64 MiB.
        return 8 * 1024 * 1024, 64 * 1024 * 1024
    # 64 MiB parts (v7x) or unknown: stay conservative, leave headroom
    # (2x-in + 2x-out of 4 MiB blocks = 16 MiB <= 32 MiB scoped limit).
    return 4 * 1024 * 1024, 32 * 1024 * 1024


def _choose_tiling(rows, cols, itemsize, target_block_bytes):
    """Pick (rows_block, col_block) honoring the (8,128) rule and byte budget."""
    # Row quantum: multiples of 8 sublanes, or the full axis when rows < 8.
    if rows < 8:
        row_quant = rows
        max_rows_block = rows
    else:
        row_quant = 8
        max_rows_block = rows if rows % 8 == 0 else _round_down(rows, 8)

    cols_aligned = cols % 128 == 0
    full_row_bytes = cols * itemsize

    if row_quant * full_row_bytes <= target_block_bytes:
        # Full-width rows fit: grow the row block up to the budget.
        rows_block = min(
            max_rows_block,
            max(row_quant,
                _round_down(target_block_bytes // full_row_bytes, row_quant)),
        )
        col_block = cols
    else:
        # Even `row_quant` full-width rows blow the budget (large H*W):
        # tile columns too, in multiples of 128 lanes.  Critical on v7x.
        rows_block = row_quant
        if cols_aligned:
            col_block = _round_down(
                target_block_bytes // (rows_block * itemsize), 128)
            col_block = min(cols, max(128, col_block))
        else:
            # TODO(synk): H*W not a multiple of 128 and larger than the budget
            # cannot be lane-tiled without masked stores; take the full axis
            # and rely on the raised vmem limit.
            col_block = cols
    return rows_block, col_block


def _split_for_megacore(rows, cols, rows_block, col_block):
    """Guarantee >=2 grid steps so dual-TC parts (v7x) shard the parallel axes."""
    steps = pl.cdiv(rows, rows_block) * pl.cdiv(cols, col_block)
    if steps >= 2:
        return rows_block, col_block
    if col_block % 256 == 0:
        return rows_block, col_block // 2
    if rows_block % 16 == 0:
        return rows_block // 2, col_block
    if rows_block > 8 and rows_block % 8 == 0:
        return 8, col_block
    if col_block % 128 == 0 and col_block > 128:
        return rows_block, 128
    return rows_block, col_block  # tiny input; nothing sensible to split


def _preprocess_kernel(x_ref, scale_ref, bias_ref, o_ref, *, rows_block):
    # scale_ref / bias_ref: (3,) per-channel constants resident in SMEM
    # (loaded once; no per-grid-step side DMAs).  Rebuild the per-row affine
    # vector from the row index: row r of the (N*C, H*W) view has channel r%3.
    row0 = pl.program_id(0) * rows_block
    ch = (row0 + jax.lax.broadcasted_iota(jnp.int32, (rows_block, 1), 0)) % 3
    sc = jnp.where(ch == 0, scale_ref[0],
                   jnp.where(ch == 1, scale_ref[1], scale_ref[2]))
    bs = jnp.where(ch == 0, bias_ref[0],
                   jnp.where(ch == 1, bias_ref[1], bias_ref[2]))
    # Upcast -> single VPU FMA -> downcast.  Always compute in f32 so bf16 /
    # uint8 inputs and bf16 outputs keep full-precision mean subtraction.
    x = x_ref[...].astype(jnp.float32)
    o_ref[...] = (x * sc + bs).astype(o_ref.dtype)


def preprocessing_layer(x, mean, std, *, out_dtype=None, target_block_bytes=None,
                        vmem_limit_bytes=None, donate_input=False):
    """Pallas equivalent of Preprocessing_Layer.forward.

    x:    (N, 3, H, W) image tensor (float or uint8)
    mean: (3,) per-channel mean
    std:  (3,) per-channel std
    out_dtype: optional output dtype (e.g. jnp.bfloat16); defaults to x.dtype.
    """
    N, C, H, W = x.shape
    assert C == 3, "Preprocessing_Layer normalizes exactly 3 channels"

    out_dtype = jnp.dtype(out_dtype) if out_dtype is not None else jnp.dtype(x.dtype)
    mean = jnp.asarray(mean, dtype=jnp.float32).reshape(3)
    std = jnp.asarray(std, dtype=jnp.float32).reshape(3)
    # Fold (x - mean) / std into one FMA: x * (1/std) + (-mean/std), kept in f32.
    scale = 1.0 / std
    bias = -mean / std

    rows, cols = N * C, H * W
    x2 = x.reshape(rows, cols)  # lane-dense 2-D view: last dim = H*W

    default_target, default_vmem = _vmem_budgets()
    target = target_block_bytes or default_target
    # Size blocks against the wider of the in/out element sizes so both
    # double-buffered streams fit the budget.
    itemsize = max(jnp.dtype(x.dtype).itemsize, out_dtype.itemsize)

    rows_block, col_block = _choose_tiling(rows, cols, itemsize, target)
    rows_block, col_block = _split_for_megacore(rows, cols, rows_block, col_block)
    grid = (pl.cdiv(rows, rows_block), pl.cdiv(cols, col_block))

    blk_elems = rows_block * col_block
    vmem_limit = vmem_limit_bytes or max(
        default_vmem,
        2 * blk_elems * jnp.dtype(x.dtype).itemsize
        + 2 * blk_elems * out_dtype.itemsize
        + (1 << 20),
    )

    kernel = functools.partial(_preprocess_kernel, rows_block=rows_block)

    aliases = {}
    if donate_input and out_dtype == jnp.dtype(x.dtype):
        aliases = {0: 0}  # overwrite x in place; halves peak HBM footprint

    out2 = pl.pallas_call(
        kernel,
        out_shape=jax.ShapeDtypeStruct((rows, cols), out_dtype),
        grid=grid,
        in_specs=[
            pl.BlockSpec((rows_block, col_block), lambda i, j: (i, j)),
            pl.BlockSpec(memory_space=pltpu.MemorySpace.SMEM),
            pl.BlockSpec(memory_space=pltpu.MemorySpace.SMEM),
        ],
        out_specs=pl.BlockSpec((rows_block, col_block), lambda i, j: (i, j)),
        compiler_params=pltpu.CompilerParams(
            dimension_semantics=("parallel", "parallel"),
            vmem_limit_bytes=int(vmem_limit),
        ),
        input_output_aliases=aliases,
    )(x2, scale, bias)

    return out2.reshape(N, C, H, W)


if __name__ == "__main__":
    key = jax.random.PRNGKey(0)
    N, C, H, W = 2, 3, 16, 16
    x = jax.random.uniform(key, (N, C, H, W), dtype=jnp.float32)

    # ImageNet-style per-channel mean/std (the module's constructor params).
    mean = jnp.array([0.485, 0.456, 0.406], dtype=jnp.float32)
    std = jnp.array([0.229, 0.224, 0.225], dtype=jnp.float32)

    out = jax.block_until_ready(preprocessing_layer(x, mean, std))

    # Reference in plain JAX (mirrors the PyTorch per-channel ops).
    ref = (x - mean[None, :, None, None]) / std[None, :, None, None]
    assert out.shape == ref.shape and out.dtype == ref.dtype
    assert jnp.allclose(out, ref, atol=1e-5, rtol=1e-5), "mismatch vs reference"

    print("KERNEL_OK")
</pallas_src>

<mosaic_0001>
module attributes {stable_mosaic.version = 11 : i64} {
  func.func @_preprocess_kernel(%arg0: i32, %arg1: i32, %arg2: memref<6x128xf32, #tpu.memory_space<vmem>>, %arg3: memref<3xf32, #tpu.memory_space<smem>>, %arg4: memref<3xf32, #tpu.memory_space<smem>>, %arg5: memref<6x128xf32, #tpu.memory_space<vmem>>) attributes {dimension_semantics = [#tpu.dimension_semantics<parallel>, #tpu.dimension_semantics<parallel>], iteration_bounds = array<i64: 1, 2>, scalar_prefetch = 0 : i64, scratch_operands = 0 : i64, tpu.core_type = #tpu.core_type<tc>, window_params = [{transform_indices = @transform_0, window_bounds = array<i64: 6, 128>}, {transform_indices = @transform_1, window_bounds = array<i64: 3>}, {transform_indices = @transform_2, window_bounds = array<i64: 3>}, {transform_indices = @transform_3, window_bounds = array<i64: 6, 128>}]} {
    %c6_i32 = arith.constant 6 : i32
    %0 = arith.muli %arg0, %c6_i32 : i32
    %1 = tpu.iota {dimensions = array<i32: 0>} : vector<6x1xi32>
    %2 = vector.broadcast %0 : i32 to vector<6x1xi32>
    %3 = arith.addi %2, %1 : vector<6x1xi32>
    %c3_i32 = arith.constant 3 : i32
    %c0_i32 = arith.constant 0 : i32
    %4 = arith.cmpi eq, %c3_i32, %c0_i32 : i32
    %c1_i32 = arith.constant 1 : i32
    %5 = arith.select %4, %c1_i32, %c3_i32 : i32
    %6 = vector.broadcast %5 : i32 to vector<6x1xi32>
    %7 = arith.remsi %3, %6 : vector<6x1xi32>
    %c0_i32_0 = arith.constant 0 : i32
    %8 = vector.broadcast %c0_i32_0 : i32 to vector<6x1xi32>
    %9 = arith.cmpi ne, %7, %8 : vector<6x1xi32>
    %c0_i32_1 = arith.constant 0 : i32
    %10 = vector.broadcast %c0_i32_1 : i32 to vector<6x1xi32>
    %11 = arith.cmpi slt, %7, %10 : vector<6x1xi32>
    %c0_i32_2 = arith.constant 0 : i32
    %12 = arith.cmpi slt, %5, %c0_i32_2 : i32
    %13 = vector.broadcast %12 : i1 to vector<6x1xi1>
    %14 = vector.broadcast %13 : vector<6x1xi1> to vector<6x1xi1>
    %15 = arith.xori %11, %14 : vector<6x1xi1>
    %16 = arith.andi %15, %9 : vector<6x1xi1>
    %17 = vector.broadcast %5 : i32 to vector<6x1xi32>
    %18 = arith.addi %7, %17 : vector<6x1xi32>
    %19 = arith.select %16, %18, %7 : vector<6x1xi1>, vector<6x1xi32>
    %c0_i32_3 = arith.constant 0 : i32
    %20 = vector.broadcast %c0_i32_3 : i32 to vector<6x1xi32>
    %21 = arith.cmpi eq, %19, %20 : vector<6x1xi32>
    %c0 = arith.constant 0 : index
    %22 = memref.load %arg3[%c0] : memref<3xf32, #tpu.memory_space<smem>>
    %c1_i32_4 = arith.constant 1 : i32
    %23 = vector.broadcast %c1_i32_4 : i32 to vector<6x1xi32>
    %24 = arith.cmpi eq, %19, %23 : vector<6x1xi32>
    %c1 = arith.constant 1 : index
    %25 = memref.load %arg3[%c1] : memref<3xf32, #tpu.memory_space<smem>>
    %c2 = arith.constant 2 : index
    %26 = memref.load %arg3[%c2] : memref<3xf32, #tpu.memory_space<smem>>
    %27 = vector.broadcast %25 : f32 to vector<6x1xf32>
    %28 = vector.broadcast %26 : f32 to vector<6x1xf32>
    %29 = arith.select %24, %27, %28 : vector<6x1xi1>, vector<6x1xf32>
    %30 = vector.broadcast %22 : f32 to vector<6x1xf32>
    %31 = arith.select %21, %30, %29 : vector<6x1xi1>, vector<6x1xf32>
    %c0_i32_5 = arith.constant 0 : i32
    %32 = vector.broadcast %c0_i32_5 : i32 to vector<6x1xi32>
    %33 = arith.cmpi eq, %19, %32 : vector<6x1xi32>
    %c0_6 = arith.constant 0 : index
    %34 = memref.load %arg4[%c0_6] : memref<3xf32, #tpu.memory_space<smem>>
    %c1_i32_7 = arith.constant 1 : i32
    %35 = vector.broadcast %c1_i32_7 : i32 to vector<6x1xi32>
    %36 = arith.cmpi eq, %19, %35 : vector<6x1xi32>
    %c1_8 = arith.constant 1 : index
    %37 = memref.load %arg4[%c1_8] : memref<3xf32, #tpu.memory_space<smem>>
    %c2_9 = arith.constant 2 : index
    %38 = memref.load %arg4[%c2_9] : memref<3xf32, #tpu.memory_space<smem>>
    %39 = vector.broadcast %37 : f32 to vector<6x1xf32>
    %40 = vector.broadcast %38 : f32 to vector<6x1xf32>
    %41 = arith.select %36, %39, %40 : vector<6x1xi1>, vector<6x1xf32>
    %42 = vector.broadcast %34 : f32 to vector<6x1xf32>
    %43 = arith.select %33, %42, %41 : vector<6x1xi1>, vector<6x1xf32>
    %c0_10 = arith.constant 0 : index
    %c0_11 = arith.constant 0 : index
    %44 = vector.load %arg2[%c0_10, %c0_11] : memref<6x128xf32, #tpu.memory_space<vmem>>, vector<6x128xf32>
    %45 = vector.broadcast %31 : vector<6x1xf32> to vector<6x128xf32>
    %46 = arith.mulf %44, %45 : vector<6x128xf32>
    %47 = vector.broadcast %43 : vector<6x1xf32> to vector<6x128xf32>
    %48 = arith.addf %46, %47 : vector<6x128xf32>
    %c0_12 = arith.constant 0 : index
    %c0_13 = arith.constant 0 : index
    %49 = vector.load %arg5[%c0_12, %c0_13] : memref<6x128xf32, #tpu.memory_space<vmem>>, vector<6x128xf32>
    tpu.vector_store %arg5[%c0_12, %c0_13], %48 {strides = array<i32>} : memref<6x128xf32, #tpu.memory_space<vmem>>, vector<6x128xf32>,
    return
  }
  func.func @transform_0(%arg0: i32, %arg1: i32) -> (i32, i32) {
    %c0_i32 = arith.constant 0 : i32
    return %arg0, %arg1 : i32, i32
  }
  func.func @transform_1(%arg0: i32, %arg1: i32) -> i32 {
    %c0_i32 = arith.constant 0 : i32
    %c0_i32_0 = arith.constant 0 : i32
    return %c0_i32 : i32
  }
  func.func @transform_2(%arg0: i32, %arg1: i32) -> i32 {
    %c0_i32 = arith.constant 0 : i32
    %c0_i32_0 = arith.constant 0 : i32
    return %c0_i32 : i32
  }
  func.func @transform_3(%arg0: i32, %arg1: i32) -> (i32, i32) {
    %c0_i32 = arith.constant 0 : i32
    return %arg0, %arg1 : i32, i32
  }
}

</mosaic_0001>

<bundles_post_ra>
// kernel: tpu_custom_call.1
= control target key start
LH: loop header
LB: loop body
LE: loop exit
PB: predicated region body
PF: predicated region fallthrough
CT: control target
= control target key end

     0   :  { %8 = vsyncpa [#allocation3], 0  ;;  %s897_s0 = inlined_call_operand.hbm [shape: f32[6,256], index: 0, kind: input, shape index: {}]   ;;  %s898_s1 = inlined_call_operand.vmem [shape: f32[3], index: 1, kind: input, shape index: {}]   ;;  %s899_s2 = inlined_call_operand.vmem [shape: f32[3], index: 2, kind: input, shape index: {}]   ;;  %s900_s3 = inlined_call_operand.hbm [shape: f32[6,256], index: 3, kind: output, shape index: {}]  }
   0x1   :  { %10 = vsyncpa [#allocation3 + $0x1], 0 }
   0x2   :  { %11 = vsyncpa [#allocation5], 0 }
   0x3   :  { %12 = vsyncpa [#allocation8], 0 }
   0x4   :  { %13 = vsyncpa [#allocation4], 0 }
   0x5   :  { %15 = vsyncpa [#allocation4 + $0x1], 0  ;;  %s676_s12 = smov 0   ;;  %s678_s13 = smov 0  }
   0x6   :  { %s680_s14 = smov 0   ;;  %s682_s15 = smov 0  }
   0x7   :  { %s684_s16 = smov 0   ;;  %s686_s17 = smov 0  }
   0x8 LB: > { %s394_s18 = sadd.s32 4294967295, %s650_s17   ;;  %s395_s19 = sadd.s32 4294967294, %s650_s17   ;;  %s650_s17 = sphi %s686_s17, %s21_s17   ;;  %s646_s16 = sphi %s684_s16, %s923_s16   ;;  %s642_s15 = sphi %s682_s15, %s922_s15   ;;  %s638_s14 = sphi %s680_s14, %s921_s14   ;;  %s634_s13 = sphi %s678_s13, %s920_s13   ;;  %s630_s12 = sphi %s676_s12, %s919_s12  }
   0x9   : > { %p55_p0 = scmp.ne.s32.totalorder %s634_s13, %s630_s12  ;;  %p710_p1 = scmp.eq.s32.totalorder %s394_s18, 0 }
   0xa   : > { %p714_p2 = scmp.eq.s32.totalorder %s394_s18, 1  ;;  %p129_p3 = scmp.eq.s32.totalorder %s395_s19, 1 }
   0xb   : > { %s905_s20 = scalar_select %p710_p1, 1, 0 }
   0xc   : > { %s906_s21 = scalar_select %p714_p2, 1, 0 }
   0xd   : > { %p720_p4 = por %p710_p1, %p55_p0  ;;  %p396_p5 = scmp.ge.s32.totalorder %s650_s17, 1 }
   0xe   : > { %p725_p6 = por %p129_p3, %p55_p0  ;;  %p136_p7 = scmp.lt.s32.totalorder %s650_s17, 3 }
   0xf   : > { %s907_s22 = scalar_select %p720_p4, 1, 0 }
  0x10   : > { %s908_s23 = scalar_select %p725_p6, 1, 0 }
  0x11   : > { %s149_s26 = sshll.u32 %s898_s1, 4  ;;  %p733_p8 = pnand %p396_p5, %p136_p7  ;;  %s150_s26 = int_to_ptr.vmem [resolvable:$true] %s149_s26 }
  0x12   : > { %s160_s30 = sshll.u32 %s899_s2, 4  ;;  %s500_s5 = scalar_lea.vmem %s150_s26, 16  ;;  %s161_s30 = int_to_ptr.vmem [resolvable:$true] %s160_s30 }
  0x13   : > { %s909_s27 = scalar_select %p733_p8, 1, 0 }
  0x14   : > { %p429_p10 = pneg %p733_p8  ;;  %p501_p12 = scmp.ne.s32.totalorder %s150_s26, %s500_s5 }
  0x15   : > { %p508_p5 = scmp.lt.s32.totalorder %s150_s26, %s150_s26  ;;  %p509_p7 = scmp.lt.s32.totalorder %s500_s5, %s500_s5 }
  0x16   : > { %p745_p11 = pnand %p429_p10, %p710_p1 }
  0x17   : > { %p510_p9 = por %p509_p7, %p508_p5 }
  0x18   : > { %p502_p13 = pneg %p745_p11 }
  0x1a   : > { %p503_p0 = pnand %p502_p13, %p501_p12 }
  0x1c   : > { %p504_p3 = pneg %p503_p0 }
  0x1e   : > { %p511_p6 = pnand %p510_p9, %p504_p3 }
  0x20   : > { %514 = shalt.err (!%p511_p6)
}
  0x21   : > { %s652_s6 = smov [#allocation6]   ;;  %s515_s7 = scalar_lea.vmem %s161_s30, 16 }
  0x22   : > { %432 = dma.vmem_to_smem (!%p745_p11), %s150_s26, 16, %s652_s6, [#allocation5]  }
  0x23   : > { %p516_p10 = scmp.ne.s32.totalorder %s161_s30, %s515_s7  ;;  %p523_p8 = scmp.lt.s32.totalorder %s161_s30, %s161_s30 }
  0x24   : > { %p524_p2 = scmp.lt.s32.totalorder %s515_s7, %s515_s7 }
  0x25   : > { %p518_p1 = pnand %p516_p10, %p502_p13 }
  0x26   : > { %p525_p12 = por %p524_p2, %p523_p8 }
  0x27   : > { %p519_p4 = pneg %p518_p1 }
  0x29   : > { %p526_p0 = pnand %p525_p12, %p519_p4 }
  0x2b   : > { %529 = shalt.err (!%p526_p0)
}
  0x2c   : > { %s653_s8 = smov [#allocation7]   ;;  %s30_s9 = sadd.s32 1, %s646_s16 }
  0x2d   : > { %435 = dma.vmem_to_smem (!%p745_p11), %s161_s30, 16, %s653_s8, [#allocation8]  }
  0x2e   : > { %s42_s10 = sadd.s32 1, %s638_s14  ;;  %p31_p1 = scmp.ge.s32.totalorder %s30_s9, 2 }
  0x2f   : > { %p49_p2 = scmp.ne.s32.totalorder %s638_s14, %s634_s13  ;;  %p50_p4 = scmp.eq.s32.totalorder %s650_s17, 0 }
  0x30   : > { %p446_p6 = scmp.lt.s32.totalorder %s650_s17, 2  ;;  %s925_s9 = smov (%p31_p1, %s30_s9), 0 }
  0x31   : > { %p51_p8 = por %p50_p4, %p49_p2  ;;  %p911_p9 = scmp.ne.s32.totalorder %s906_s21, 0 }
  0x32   : > { %s38_s18 = ssub.s32 %s646_s16, %s925_s9  ;;  %s171_s19 = sand.u32 1, %s638_s14  }
  0x33   : > { %p765_p13 = por %p911_p9, %p49_p2  ;;  %p40_p3 = scmp.eq.s32.totalorder %s38_s18, 0 }
  0x34   : > { %s400_s24 = sshll.u32 %s171_s19, 3  ;;  %s401_s25 = sshll.u32 %s646_s16, 7 }
  0x35   : > { %s774_s26 = scalar_select %p40_p3, %s638_s14, %s42_s10  }
  0x36   : > { %s779_s30 = scalar_lea.hbm %s897_s0, %s401_s25  ;;  %s175_s21 = scalar_lea.vmem [#allocation2], %s400_s24 }
  0x37   : > { %s184_s4 = sshll.u32 %s175_s21, 4  ;;  %p783_p11 = pnand %p446_p6, %p51_p8  ;;  %s787_s4 = int_to_ptr.vmem [resolvable:$true] %s184_s4 }
  0x38   : > { %s172_s6 = scalar_lea.sflag [#allocation3], %s171_s19  ;;  %s530_s7 = scalar_lea.hbm %s779_s30, 128 }
  0x39   : > { %p531_p5 = scmp.ne.s32.totalorder %s779_s30, %s530_s7  ;;  %p532_p7 = pneg %p783_p11 }
  0x3a   : > { %s535_s18 = scalar_lea.hbm %s897_s0, 256  ;;  %p536_p0 = scmp.lt.u32.totalorder %s779_s30, %s897_s0 }
  0x3b   : > { %p533_p10 = pnand %p532_p7, %p531_p5  ;;  %p537_p1 = scmp.lt.u32.totalorder %s535_s18, %s530_s7 }
  0x3c   : > { %p539_p4 = scmp.lt.u32.totalorder %s530_s7, %s779_s30 }
  0x3d   : > { %p534_p12 = pneg %p533_p10  ;;  %p538_p2 = por %p537_p1, %p536_p0 }
  0x3f   : > { %p540_p6 = por %p539_p4, %p538_p2 }
  0x41   : > { %p541_p8 = pnand %p540_p6, %p534_p12 }
  0x43   : > { %544 = shalt.err (!%p541_p8)
}
  0x44   : > { %s545_s19 = scalar_lea.vmem %s787_s4, 128  ;;  %s654_s28 = smov [#allocation2]  }
  0x45   : > { %p546_p9 = scmp.ne.s32.totalorder %s787_s4, %s545_s19  ;;  %s550_s29 = sshll.u32 %s654_s28, 4  ;;  %s551_s29 = int_to_ptr.vmem [resolvable:$false] %s550_s29 }
  0x46   : > { %s552_s21 = scalar_lea.vmem %s551_s29, 256  ;;  %p553_p10 = scmp.lt.s32.totalorder %s787_s4, %s551_s29 }
  0x47   : > { %p548_p3 = pnand %p546_p9, %p532_p7  ;;  %p554_p0 = scmp.lt.s32.totalorder %s552_s21, %s545_s19 }
  0x49   : > { %p549_p5 = pneg %p548_p3  ;;  %p555_p1 = por %p554_p0, %p553_p10 }
  0x4b   : > { %p556_p2 = pnand %p555_p1, %p549_p5 }
  0x4d   : > { %559 = shalt.err (!%p556_p2)
}
  0x4e   : > { %439 = dma.hbm_to_vmem [thread:$0]  (!%p783_p11), %s779_s30, 128, %s787_s4, %s172_s6  }
  0x4f   : > { %p914_p12 = scmp.ne.s32.totalorder %s909_s27, 0 }
  0x50   : > { %s817_s7 = sand.u32 (!%p914_p12), 1, %s634_s13   ;;  %p915_p7 = scmp.ne.s32.totalorder (!%p914_p12), %s907_s22, 0 }
  0x51   : > { %193 = sbr.rel (%p914_p12) target bundleno = 132 (0x84), region = 32  ;;  %s403_s8 = sshll.u32 (!%p914_p12), %s817_s7, 3 }
  0x52   : > { %s196_s10 = scalar_lea.sflag (!%p914_p12), [#allocation3], %s817_s7  ;;  %s823_s18 = scalar_lea.vmem (!%p914_p12), [#allocation2], %s403_s8 }
  0x58   : > { %613 = dma.done.wait (%p915_p7), %s196_s10, 128  }
  0x59   : > { %615 = vsyncadd (%p915_p7), %s196_s10, 4294967168  ;;  %p916_p11 = scmp.ne.s32.totalorder %s905_s20, 0 }
  0x5b   : > { %617 = dma.done.wait (%p916_p11), [#allocation5], 16  }
  0x5c   : > { %619 = vsyncadd (%p916_p11), [#allocation5], 4294967280 }
  0x5d   : > { %621 = dma.done.wait (%p916_p11), [#allocation8], 16  }
  0x5e   : > { %623 = vsyncadd (%p916_p11), [#allocation8], 4294967280 }
  0x5f   : > { %212 = sfence }
  0x60   : > { %v232_v0 = vlaneseq  ;;  %s407_s22 = sld [smem:[#allocation6 + $0x1]]  ;;  %s408_s27 = sld [smem:[#allocation6 + $0x2]]  ;;  %v270_v15 = vld [vmem:[%s823_s18] sm:$0x3f] }
  0x61   : > { %s409_s30 = sld [smem:[#allocation7 + $0x1]]  ;;  %s410_s4 = sld [smem:[#allocation7 + $0x2]] }
  0x62   : > { %v233_v1 = vshrl.u32 %v232_v0, 7  ;;  %s253_s5 = sld [smem:[#allocation6]]  ;;  %s230_s20 = scalar_lea.vmem [#allocation9], %s403_s8 }
  0x63   : > { %s262_s6 = sld [smem:[#allocation7]]  ;;  %s290_s24 = sshll.u32 %s230_s20, 4  ;;  %s845_s24 = int_to_ptr.vmem [resolvable:$true] %s290_s24 }
  0x64   : > { %v837_v2 = vmul.u32.u64.low 2863311531, %v233_v1  ;;  %v838_v3 = vmul.u32.u64.high 2863311531, %v233_v1, %v837_v2  ;;  %s412_s25 = sshll.u32 %s642_s15, 7  ;;  %s275_s21 = scalar_lea.sflag [#allocation4], %s817_s7 }
  0x65   : > { %s850_s29 = scalar_lea.hbm %s900_s3, %s412_s25  ;;  %s560_s10 = scalar_lea.vmem %s845_s24, 128 }
  0x66   : > { %v242_v4 = vshrl.u32 %v838_v3, 1  ;;  %v257_v8 = vstv %s407_s22  ;;  %v258_v9 = vstv %s408_s27  ;;  %p561_p4 = scmp.ne.s32.totalorder %s845_s24, %s560_s10  ;;  %s655_s15 = smov [#allocation9]  }
  0x67   : > { %v265_v10 = vstv %s409_s30  ;;  %v266_v11 = vstv %s410_s4  ;;  %s564_s8 = sshll.u32 %s655_s15, 4  ;;  %s565_s8 = int_to_ptr.vmem [resolvable:$false] %s564_s8 }
  0x68   : > { %v243_v5 = vmul.u32 3, %v242_v4  ;;  %v260_v13 = vstv %s253_s5  ;;  %p562_p6 = pnand %p561_p4, %p765_p13  ;;  %s566_s18 = scalar_lea.vmem %s565_s8, 256 }
  0x69   : > { %v268_v14 = vstv %s262_s6  ;;  %p567_p9 = scmp.lt.s32.totalorder %s845_s24, %s565_s8  ;;  %p568_p3 = scmp.lt.s32.totalorder %s566_s18, %s560_s10 }
  0x6a   : > { %v244_v6 = vsub.s32 %v233_v1, %v243_v5  ;;  %p563_p8 = pneg %p562_p6 }
  0x6b   : > { %p569_p5 = por %p568_p3, %p567_p9 }
  0x6c   : > { %vm247_vm0 = vcmp.ne.s32.totalorder %v244_v6, 0  ;;  %vm248_vm1 = vcmp.lt.s32.totalorder %v244_v6, 0  ;;  %v250_v7 = vadd.s32 3, %v244_v6 }
  0x6d   : > { %vm249_vm2 = vmand %vm248_vm1, %vm247_vm0  ;;  %p570_p10 = pnand %p569_p5, %p563_p8 }
  0x6e   : > { %v251_v12 = vsel %vm249_vm2, %v250_v7, %v244_v6 }
  0x6f   : > { %vm252_vm3 = vcmp.eq.s32.totalorder %v251_v12, 0  ;;  %vm254_vm4 = vcmp.eq.s32.totalorder %v251_v12, 1 }
  0x70   : > { %v259_v16 = vsel %vm254_vm4, %v257_v8, %v258_v9  ;;  %v267_v17 = vsel %vm254_vm4, %v265_v10, %v266_v11 }
  0x71   : > { %v261_v18 = vsel %vm252_vm3, %v260_v13, %v259_v16  ;;  %v269_v19 = vsel %vm252_vm3, %v268_v14, %v267_v17 }
  0x72   : > { %v271_v20 = vmul.f32 %v270_v15, %v261_v18 }
  0x74   : > { %v272_v21 = vadd.f32 %v271_v20, %v269_v19 }
  0x76   : > { %273 = vst [vmem:[%s230_s20] sm:$0x3f] %v272_v21 }
  0x77   : > { %573 = shalt.err (!%p570_p10)
}
  0x78   : > { %s574_s7 = scalar_lea.hbm %s850_s29, 128  ;;  %s578_s30 = scalar_lea.hbm %s900_s3, 256 }
  0x79   : > { %p575_p0 = scmp.ne.s32.totalorder %s850_s29, %s574_s7  ;;  %p579_p12 = scmp.lt.u32.totalorder %s850_s29, %s900_s3 }
  0x7a   : > { %p580_p7 = scmp.lt.u32.totalorder %s578_s30, %s574_s7  ;;  %p582_p4 = scmp.lt.u32.totalorder %s574_s7, %s850_s29 }
  0x7b   : > { %p576_p1 = pnand %p575_p0, %p765_p13 }
  0x7c   : > { %p581_p11 = por %p580_p7, %p579_p12 }
  0x7d   : > { %p577_p2 = pneg %p576_p1 }
  0x7e   : > { %p583_p6 = por %p582_p4, %p581_p11 }
  0x80   : > { %p584_p8 = pnand %p583_p6, %p577_p2 }
  0x82   : > { %587 = shalt.err (!%p584_p8)
}
  0x83   : > { %427 = dma.vmem_to_hbm [thread:$0]  (%p765_p13), %s845_s24, 128, %s850_s29, %s275_s21  }
  0x84 PF: > { %s302_s6 = sand.u32 1, %s630_s12   ;;  %p917_p9 = scmp.ne.s32.totalorder %s908_s23, 0 }
  0x85   : > { %p918_p3 = scmp.ge.s32.totalorder %s650_s17, 2  ;;  %s303_s20 = scalar_lea.sflag [#allocation4], %s302_s6 }
  0x87   : > { %p441_p5 = pnand %p918_p3, %p917_p9 }
  0x89   : > { %625 = dma.done.wait (!%p441_p5), %s303_s20, 128  }
  0x8a   : > { %627 = vsyncadd (!%p441_p5), %s303_s20, 4294967168  ;;  %s21_s17 = sadd.s32 1, %s650_s17   ;;  %s919_s12 = smov %s634_s13 }
  0x8b   : > { %p18_p10 = scmp.ge.s32.totalorder %s21_s17, 4   ;;  %s920_s13 = smov %s638_s14 }
  0x8c   : > { %s921_s14 = smov %s774_s26  ;;  %s922_s15 = smov %s646_s16 }
  0x8d   : > { %s923_s16 = smov %s925_s9  ;;  %20 = sbr.rel (!%p18_p10) target bundleno = 8 (0x8), region = 86 }
  0x94   :  { %308 = vsyncpa [#allocation3], 1 }
  0x95   :  { %310 = vsyncpa [#allocation3 + $0x1], 1 }
  0x96   :  { %311 = vsyncpa [#allocation4], 1 }
  0x97   :  { %313 = vsyncpa [#allocation4 + $0x1], 1 }
  0x98   :  { %314 = vsyncpa [#allocation5], 1 }
  0x99   :  { %316 = vsyncpa [#allocation5 + $0x1], 1 }
  0x9a   :  { %317 = vsyncpa [#allocation8], 1 }

</bundles_post_ra>
